<compile_context>
chip_gen: v5e
topology: v5e:2x2
jax: 0.10.0
libtpu: 0.0.40
codegen_flags: <defaults>
</compile_context>

<pallas_src>
import functools

import jax
import jax.numpy as jnp
from jax.experimental import pallas as pl
from jax.experimental.pallas import tpu as pltpu

_LANE = 128


def _huber_kernel(y_true_ref, y_pred_ref, out_ref, *, delta, clamp_log_arg):
    error = y_true_ref[...] - y_pred_ref[...]
    abs_err = jnp.abs(error)
    small_loss = 0.5 * error * error
    log_arg = abs_err + (1.0 - delta)
    if clamp_log_arg:
        # Only possible to hit log_arg <= 0 when delta >= 1, and then only on
        # elements where the small branch is selected (abs_err <= delta), so
        # the clamp never changes a selected output -- it just avoids
        # materializing -inf/NaN in VMEM.  Skipped entirely when delta < 1.
        log_arg = jnp.maximum(log_arg, 1e-30)
    large_loss = (delta * delta) * 0.5 + (delta * delta) * jnp.log(log_arg)
    out_ref[...] = jnp.where(abs_err <= delta, small_loss, large_loss)


def _huber_jnp(y_true, y_pred, delta):
    # Plain-jnp path for tiny inputs / the <=127-element misaligned tail.
    error = y_true - y_pred
    abs_err = jnp.abs(error)
    small = 0.5 * error * error
    large = delta * delta * 0.5 + delta * delta * jnp.log(abs_err + (1.0 - delta))
    return jnp.where(abs_err <= delta, small, large)


def _sublane_multiple(itemsize):
    # Sub-32-bit dtypes pack along sublanes: f32 -> 8, bf16 -> 16, int8/fp8 -> 32.
    return 8 * max(1, 4 // int(itemsize))


def _chip_info():
    """Best-effort (num_tensorcores_per_chip, is_v5e) from device_kind."""
    num_tc, is_v5e = 1, False
    try:
        kind = (jax.devices()[0].device_kind or "").lower()
        if "v5 lite" in kind or "v5e" in kind or "v5litepod" in kind:
            is_v5e = True
        if "7" in kind:  # v7x exposes 2 TensorCores per chip
            num_tc = 2
    except Exception:
        pass
    return num_tc, is_v5e


def _run_huber_slab(yt_flat, yp_flat, delta):
    """Run the Pallas kernel over a 128-aligned flat vector; returns flat out."""
    n = int(yt_flat.shape[0])
    dtype = yt_flat.dtype
    itemsize = jnp.dtype(dtype).itemsize
    sublane = _sublane_multiple(itemsize)
    num_tc, is_v5e = _chip_info()

    # Wide lane-dense slab: largest candidate width that divides n (128 always
    # does since n % 128 == 0) for long unmasked vld/vst runs and long DMA rows.
    width = _LANE
    for cand in (2048, 1024, 512, 256):
        if n % cand == 0:
            width = cand
            break
    rows = n // width
    yt2 = yt_flat.reshape(rows, width)  # zero-copy reshape
    yp2 = yp_flat.reshape(rows, width)

    # Tile sizing: ~2 MiB (v6e/v7x) / ~1 MiB (v5e).  6 live double-buffered
    # tiles fit every generation's default scoped VMEM with headroom, and
    # these sizes already sit on the ~85% HBM-roofline plateau.
    target_block_bytes = (1 << 20) if is_v5e else (2 << 20)
    row_bytes = width * itemsize
    block_rows = max(sublane, (target_block_bytes // row_bytes) // sublane * sublane)
    if block_rows >= rows:
        block_rows = rows  # single block == full array dims (always legal)
    elif num_tc == 2:
        # v7x only: the "parallel" grid axis is sharded across 2 TensorCores,
        # each with its own HBM path -- keep an even, balanced step count.
        # (v5e/v6e are single-TC: the grid is a serial loop, so no splitting.)
        steps = pl.cdiv(rows, block_rows)
        if steps < 2 or steps % 2 != 0:
            steps = max(2, steps + (steps % 2))
            block_rows = max(sublane, pl.cdiv(pl.cdiv(rows, steps), sublane) * sublane)

    grid = pl.cdiv(rows, block_rows)

    kernel = functools.partial(
        _huber_kernel,
        delta=float(delta),
        clamp_log_arg=float(delta) >= 1.0,
    )

    cost = pl.CostEstimate(
        flops=10 * n,
        transcendentals=n,
        bytes_accessed=3 * n * itemsize,
    )

    out2 = pl.pallas_call(
        kernel,
        out_shape=jax.ShapeDtypeStruct((rows, width), dtype),
        grid_spec=pltpu.PrefetchScalarGridSpec(
            num_scalar_prefetch=0,
            grid=(grid,),
            in_specs=[
                pl.BlockSpec((block_rows, width), lambda i: (i, 0)),
                pl.BlockSpec((block_rows, width), lambda i: (i, 0)),
            ],
            out_specs=pl.BlockSpec((block_rows, width), lambda i: (i, 0)),
        ),
        compiler_params=pltpu.CompilerParams(
            dimension_semantics=("parallel",),
        ),
        cost_estimate=cost,
    )(yt2, yp2)
    return out2.reshape(-1)


def custom_huber_loss(y_true, y_pred, delta):
    assert y_true.shape == y_pred.shape
    assert y_true.dtype == y_pred.dtype
    orig_shape = y_true.shape
    total = int(y_true.size)
    if total == 0:
        return jnp.zeros(orig_shape, y_true.dtype)

    yt_flat = y_true.reshape(-1)  # zero-copy for contiguous inputs
    yp_flat = y_pred.reshape(-1)

    aligned = (total // _LANE) * _LANE
    if aligned == total:
        # Fast path (covers the test shape): fully 128-aligned, zero-copy slab,
        # no pad / slice HBM passes at all.
        return _run_huber_slab(yt_flat, yp_flat, delta).reshape(orig_shape)
    if aligned == 0:
        # Tiny input (<128 elements): grid/DMA overhead not worth a kernel.
        return _huber_jnp(y_true, y_pred, float(delta)).reshape(orig_shape)

    # Misaligned total: kernel on the 128-aligned prefix, <=127-element tail
    # with plain jnp, stitched with a concat (tail op is negligible).  This
    # replaces the previous full-array jnp.pad on both inputs + output slice.
    main = _run_huber_slab(yt_flat[:aligned], yp_flat[:aligned], delta)
    tail = _huber_jnp(yt_flat[aligned:], yp_flat[aligned:], float(delta))
    return jnp.concatenate([main, tail]).reshape(orig_shape)


def _reference(y_true, y_pred, delta):
    error = y_true - y_pred
    is_small = jnp.abs(error) <= delta
    small = 0.5 * error ** 2
    large = delta ** 2 / 2 + delta ** 2 * jnp.log(jnp.abs(error) + (1 - delta))
    return jnp.where(is_small, small, large)


if __name__ == "__main__":
    key = jax.random.PRNGKey(0)
    k1, k2 = jax.random.split(key)

    # Small NCHW-shaped inputs (batch=2, channels=4, spatial=16x16).
    shape = (2, 4, 16, 16)
    y_true = jax.random.normal(k1, shape, dtype=jnp.float32) * 2.0
    y_pred = jax.random.normal(k2, shape, dtype=jnp.float32) * 2.0
    delta = 1.0

    out = custom_huber_loss(y_true, y_pred, delta)
    out = jax.block_until_ready(out)

    ref = _reference(y_true, y_pred, delta)
    assert out.shape == shape
    assert jnp.allclose(out, ref, atol=1e-5, rtol=1e-5), "mismatch vs reference"

    print("KERNEL_OK")
</pallas_src>

<mosaic_0001>
module attributes {stable_mosaic.version = 11 : i64} {
  func.func @_huber_kernel(%arg0: i32, %arg1: memref<1x2048xf32, #tpu.memory_space<vmem>>, %arg2: memref<1x2048xf32, #tpu.memory_space<vmem>>, %arg3: memref<1x2048xf32, #tpu.memory_space<vmem>>) attributes {dimension_semantics = [#tpu.dimension_semantics<parallel>], iteration_bounds = array<i64: 1>, scalar_prefetch = 0 : i64, scratch_operands = 0 : i64, tpu.core_type = #tpu.core_type<tc>, window_params = [{transform_indices = @transform_0, window_bounds = array<i64: 1, 2048>}, {transform_indices = @transform_1, window_bounds = array<i64: 1, 2048>}, {transform_indices = @transform_2, window_bounds = array<i64: 1, 2048>}]} {
    %c0 = arith.constant 0 : index
    %c0_0 = arith.constant 0 : index
    %0 = vector.load %arg1[%c0, %c0_0] : memref<1x2048xf32, #tpu.memory_space<vmem>>, vector<1x2048xf32>
    %c0_1 = arith.constant 0 : index
    %c0_2 = arith.constant 0 : index
    %1 = vector.load %arg2[%c0_1, %c0_2] : memref<1x2048xf32, #tpu.memory_space<vmem>>, vector<1x2048xf32>
    %2 = arith.subf %0, %1 : vector<1x2048xf32>
    %3 = math.absf %2 : vector<1x2048xf32>
    %cst = arith.constant 5.000000e-01 : f32
    %4 = vector.broadcast %cst : f32 to vector<1x2048xf32>
    %5 = arith.mulf %4, %2 : vector<1x2048xf32>
    %6 = arith.mulf %5, %2 : vector<1x2048xf32>
    %cst_3 = arith.constant 0.000000e+00 : f32
    %7 = vector.broadcast %cst_3 : f32 to vector<1x2048xf32>
    %8 = arith.addf %3, %7 : vector<1x2048xf32>
    %cst_4 = arith.constant 1.000000e-30 : f32
    %9 = vector.broadcast %cst_4 : f32 to vector<1x2048xf32>
    %10 = arith.maximumf %8, %9 : vector<1x2048xf32>
    %11 = math.log %10 : vector<1x2048xf32>
    %cst_5 = arith.constant 1.000000e+00 : f32
    %12 = vector.broadcast %cst_5 : f32 to vector<1x2048xf32>
    %13 = arith.mulf %12, %11 : vector<1x2048xf32>
    %cst_6 = arith.constant 5.000000e-01 : f32
    %14 = vector.broadcast %cst_6 : f32 to vector<1x2048xf32>
    %15 = arith.addf %14, %13 : vector<1x2048xf32>
    %cst_7 = arith.constant 1.000000e+00 : f32
    %16 = vector.broadcast %cst_7 : f32 to vector<1x2048xf32>
    %17 = arith.cmpf ole, %3, %16 : vector<1x2048xf32>
    %18 = arith.select %17, %6, %15 : vector<1x2048xi1>, vector<1x2048xf32>
    %c0_8 = arith.constant 0 : index
    %c0_9 = arith.constant 0 : index
    %19 = vector.load %arg3[%c0_8, %c0_9] : memref<1x2048xf32, #tpu.memory_space<vmem>>, vector<1x2048xf32>
    tpu.vector_store %arg3[%c0_8, %c0_9], %18 {strides = array<i32>} : memref<1x2048xf32, #tpu.memory_space<vmem>>, vector<1x2048xf32>,
    return
  }
  func.func @transform_0(%arg0: i32) -> (i32, i32) {
    %c0_i32 = arith.constant 0 : i32
    %c0_i32_0 = arith.constant 0 : i32
    return %arg0, %c0_i32 : i32, i32
  }
  func.func @transform_1(%arg0: i32) -> (i32, i32) {
    %c0_i32 = arith.constant 0 : i32
    %c0_i32_0 = arith.constant 0 : i32
    return %arg0, %c0_i32 : i32, i32
  }
  func.func @transform_2(%arg0: i32) -> (i32, i32) {
    %c0_i32 = arith.constant 0 : i32
    %c0_i32_0 = arith.constant 0 : i32
    return %arg0, %c0_i32 : i32, i32
  }
}

</mosaic_0001>

<bundles_post_ra>
// kernel: tpu_custom_call.1
= control target key start
LH: loop header
LB: loop body
LE: loop exit
PB: predicated region body
PF: predicated region fallthrough
CT: control target
= control target key end

     0   :  { %7 = vsyncpa [#allocation3], 0  ;;  %s198_s0 = inlined_call_operand.hbm [shape: f32[1,2048], index: 0, kind: input, shape index: {}]   ;;  %s199_s1 = inlined_call_operand.hbm [shape: f32[1,2048], index: 1, kind: input, shape index: {}]   ;;  %s200_s2 = inlined_call_operand.hbm [shape: f32[1,2048], index: 2, kind: output, shape index: {}]  }
   0x1   :  { %8 = vsyncpa [#allocation6], 0 }
   0x2   :  { %9 = vsyncpa [#allocation4], 0  ;;  %s15_s11 = sshll.u32 %s198_s0, 4  ;;  %s171_s12 = smov [#allocation2]   ;;  %s16_s11 = int_to_ptr.hbm [resolvable:$true] %s15_s11 }
   0x3   :  { %s17_s13 = sshll.u32 %s171_s12, 4  ;;  %s26_s16 = sshll.u32 %s199_s1, 4  ;;  %s18_s13 = int_to_ptr.vmem [resolvable:$true] %s17_s13  ;;  %s27_s16 = int_to_ptr.hbm [resolvable:$true] %s26_s16 }
   0x4   :  { %20 = dma.hbm_to_vmem [thread:$0]  %s16_s11, 256, %s18_s13, [#allocation3]  }
   0x5   :  { %s172_s17 = smov [#allocation5]  }
   0x6   :  { %s28_s18 = sshll.u32 %s172_s17, 4  ;;  %s29_s18 = int_to_ptr.vmem [resolvable:$true] %s28_s18 }
   0x7   :  { %31 = dma.hbm_to_vmem [thread:$0]  %s27_s16, 256, %s29_s18, [#allocation6]  }
   0x8   :  { %165 = dma.done.wait [#allocation3], 256  }
   0x9   :  { %166 = vsyncadd [#allocation3], 4294967040 }
   0xa   :  { %167 = dma.done.wait [#allocation6], 256  }
   0xb   :  { %168 = vsyncadd [#allocation6], 4294967040  ;;  %v40_v0 = vld [vmem:[#allocation2] sm:$0xff]  ;;  %v42_v1 = vld [vmem:[#allocation5] sm:$0xff]  ;;  %s173_s0 = smov [#allocation7]   ;;  %s75_s21 = sshll.u32 %s200_s2, 4  ;;  %s76_s21 = int_to_ptr.hbm [resolvable:$true] %s75_s21 }
   0xc   :  { %v41_v2 = vld [vmem:[#allocation2 + $0x8] sm:$0xff]  ;;  %v44_v3 = vsub.f32 %v40_v0, %v42_v1  ;;  %v43_v4 = vld [vmem:[#allocation5 + $0x8] sm:$0xff]  ;;  %s73_s1 = sshll.u32 %s173_s0, 4  ;;  %s74_s1 = int_to_ptr.vmem [resolvable:$true] %s73_s1 }
   0xd   :  { %v45_v5 = vsub.f32 %v41_v2, %v43_v4 }
   0xe   :  { %v46_v6 = vand.u32 2147483647, %v44_v3  ;;  %v48_v10 = vmul.f32 0.5, %v44_v3 }
   0xf   :  { %v47_v7 = vand.u32 2147483647, %v45_v5  ;;  %v49_v11 = vmul.f32 0.5, %v45_v5 }
  0x10   :  { %v54_v8 = vmax.f32 %v46_v6, 1e-30  ;;  %v50_v14 = vmul.f32 %v48_v10, %v44_v3  ;;  %vm62_vm0 = vcmp.le.f32.partialorder %v46_v6, 1.0 }
  0x11   :  { %v55_v9 = vmax.f32 %v47_v7, 1e-30  ;;  %v51_v16 = vmul.f32 %v49_v11, %v45_v5  ;;  %vm63_vm1 = vcmp.le.f32.partialorder %v47_v7, 1.0 }
  0x12   :  { %89 = vlog2.f32 %v54_v8 }
  0x13   :  { %91 = vlog2.f32 %v55_v9 }
  0x18   :  { %v90_v12 = vpop.eup %89 }
  0x19   :  { %v92_v13 = vpop.eup %91  ;;  %v57_v15 = vmul.f32 0.6931472, %v90_v12 }
  0x1a   :  { %v59_v17 = vmul.f32 0.6931472, %v92_v13 }
  0x1b   :  { %v60_v18 = vadd.f32 0.5, %v57_v15 }
  0x1c   :  { %v61_v19 = vadd.f32 0.5, %v59_v17 }
  0x1d   :  { %v64_v20 = vsel %vm62_vm0, %v50_v14, %v60_v18 }
  0x1e   :  { %66 = vst [vmem:[#allocation7] sm:$0xff] %v64_v20  ;;  %v65_v21 = vsel %vm63_vm1, %v51_v16, %v61_v19 }
  0x1f   :  { %67 = vst [vmem:[#allocation7 + $0x8] sm:$0xff] %v65_v21 }
  0x20   :  { %78 = dma.vmem_to_hbm [thread:$0]  %s74_s1, 256, %s76_s21, [#allocation4]  }
  0x21   :  { %169 = dma.done.wait [#allocation4], 256  }
  0x22   :  { %170 = vsyncadd [#allocation4], 4294967040 }
  0x23   :  { %83 = vsyncpa [#allocation3], 1 }
  0x24   :  { %84 = vsyncpa [#allocation6], 1 }
  0x25   :  { %85 = vsyncpa [#allocation4], 1 }

</bundles_post_ra>
